<compile_context>
chip_gen: v6e
topology: v6e:2x2x1
jax: 0.10.0
libtpu: 0.0.40
codegen_flags: <defaults>
</compile_context>

<pallas_src>
import math

import jax
import jax.numpy as jnp
from jax.experimental import pallas as pl
from jax.experimental.pallas import tpu as pltpu


def _groupwise_linear_kernel(x_ref, w_ref, b_ref, o_ref):
    # x_ref: (TB, C, D) batch tile
    # w_ref: (1,  C, D) VMEM-resident weights (constant block index)
    # b_ref: (1,  C)    VMEM-resident bias
    # o_ref: (TB, C)
    x = x_ref[...].astype(jnp.float32)          # in-kernel upcast (bf16 inputs OK)
    w = w_ref[...].astype(jnp.float32)
    s = jnp.sum(x * w, axis=-1)                 # VPU multiply + XLU lane reduce over D
    s = s + b_ref[...].astype(jnp.float32)      # (1, C) broadcasts over TB
    o_ref[...] = s.astype(o_ref.dtype)


def _vmem_config():
    """Generation-aware (scoped VMEM limit, per-kernel tile budget) in bytes."""
    try:
        cap = int(pltpu.get_tpu_info().vmem_capacity_bytes)
    except Exception:
        cap = 64 * 1024 * 1024                  # conservative: v7x per-TC VMEM
    # v5e/v6e (128 MiB): 48 MiB scoped limit; v7x (64 MiB): 40 MiB.
    limit = min(48 * 1024 * 1024, (cap * 5) // 8)
    budget = min(16 * 1024 * 1024, limit // 3)  # what the tile picker may use
    return budget, limit


def _pick_batch_tile(B, C, D, x_isz, o_isz, vmem_budget_bytes,
                     target_tile_bytes=4 * 1024 * 1024, min_grid=4):
    """Batch-tile rows: multiple of 8 (or the full batch for tiny B), sized so
    the per-step x DMA is a few MiB, the grid has several steps, and the
    double-buffered tiles + in-kernel f32 temporaries fit the VMEM budget."""
    if B <= 8:
        return B                                 # full-extent leading block
    row_x = C * D * x_isz
    # per batch-row VMEM: 2x double-buffered x tile + f32 temporaries
    # (upcast x and x*w product) + 2x double-buffered out tile
    bytes_per_row = 2 * row_x + 2 * C * D * 4 + 2 * C * o_isz
    fixed = 2 * (C * D * 4 + C * 4)              # resident W + bias (f32 bound)
    tb_vmem = (vmem_budget_bytes - fixed) // max(bytes_per_row, 1)
    tb_bw = max(1, target_tile_bytes // max(row_x, 1))
    tb = min(tb_vmem, tb_bw)
    if B >= min_grid * 8:
        tb = min(tb, B // min_grid)              # keep >= min_grid pipeline steps
    tb = max(8, (tb // 8) * 8)
    tb = min(tb, max(8, (B // 8) * 8))           # never exceed the batch
    return tb


def groupwise_linear(x, W, b, *, block_b=None, out_dtype=None):
    """x: (B, C, D), W: (1, C, D), b: (1, C)  ->  (B, C)"""
    B, C, D = x.shape
    assert W.shape == (1, C, D), W.shape
    assert b.shape == (1, C), b.shape
    out_dtype = x.dtype if out_dtype is None else out_dtype

    x_isz = jnp.dtype(x.dtype).itemsize
    o_isz = jnp.dtype(out_dtype).itemsize
    vmem_budget, vmem_limit = _vmem_config()

    # Guard: resident W + bias plus one minimal (8-row) tile must fit VMEM.
    fixed = 2 * (C * D * 4 + C * 4)
    min_tile = 8 * (2 * C * D * x_isz + 2 * C * D * 4 + 2 * C * o_isz)
    if fixed + min_tile > vmem_limit:
        # TODO(synk): for very large num_class*hidden_dim, add a hidden_dim (D)
        # reduction grid axis with an f32 accumulator instead of resident W.
        raise NotImplementedError(
            "num_class*hidden_dim too large for VMEM-resident weights")

    if block_b is not None:
        tb = int(block_b)
        tb = B if tb >= B else max(8, (tb // 8) * 8)
    else:
        tb = _pick_batch_tile(B, C, D, x_isz, o_isz, vmem_budget)
        # v7x: an odd 'parallel' grid idles one TensorCore on the last step;
        # try a slightly smaller tile that yields an even grid length.
        grid_len = pl.cdiv(B, tb)
        if grid_len > 1 and grid_len % 2 == 1:
            for cand in range(tb - 8, max(7, tb - 4 * 8), -8):
                if cand >= 8 and pl.cdiv(B, cand) % 2 == 0:
                    tb = cand
                    break

    grid = (pl.cdiv(B, tb),)   # ragged last block handled by Pallas masking

    bytes_accessed = int(x.size) * x_isz \
        + int(W.size) * jnp.dtype(W.dtype).itemsize \
        + int(b.size) * jnp.dtype(b.dtype).itemsize \
        + B * C * o_isz

    out = pl.pallas_call(
        _groupwise_linear_kernel,
        out_shape=jax.ShapeDtypeStruct((B, C), out_dtype),
        grid=grid,
        in_specs=[
            # batch-tiled, double-buffered input
            pl.BlockSpec((tb, C, D), lambda i: (i, 0, 0)),
            # constant block index -> stays VMEM-resident across grid steps
            pl.BlockSpec((1, C, D), lambda i: (0, 0, 0)),
            pl.BlockSpec((1, C), lambda i: (0, 0)),
        ],
        out_specs=pl.BlockSpec((tb, C), lambda i: (i, 0)),
        compiler_params=pltpu.CompilerParams(
            # batch axis is embarrassingly parallel -> split across v7x's 2 TCs
            dimension_semantics=("parallel",),
            vmem_limit_bytes=int(vmem_limit),
        ),
        cost_estimate=pl.CostEstimate(
            flops=2 * B * C * D,
            transcendentals=0,
            bytes_accessed=bytes_accessed,
        ),
    )(x, W, b)
    return out


def init_params(key, num_class, hidden_dim, dtype=jnp.float32):
    # Matches reset_parameters(): uniform(-stdv, stdv), stdv = 1/sqrt(hidden_dim)
    stdv = 1.0 / math.sqrt(hidden_dim)
    kw, kb = jax.random.split(key)
    W = jax.random.uniform(kw, (1, num_class, hidden_dim),
                           minval=-stdv, maxval=stdv, dtype=dtype)
    b = jax.random.uniform(kb, (1, num_class),
                           minval=-stdv, maxval=stdv, dtype=dtype)
    return W, b


if __name__ == "__main__":
    key = jax.random.PRNGKey(0)
    kx, kp, kx2 = jax.random.split(key, 3)

    # Small demo shape consistent with the module.  NOTE: at this size the
    # pallas_call is pure launch overhead; benchmark at production shapes.
    B, num_class, hidden_dim = 2, 8, 32
    x = jax.random.normal(kx, (B, num_class, hidden_dim), dtype=jnp.float32)
    W, bias = init_params(kp, num_class, hidden_dim, dtype=jnp.float32)

    out = jax.block_until_ready(groupwise_linear(x, W, bias))
    ref = jnp.sum(W * x, axis=-1) + bias
    assert out.shape == (B, num_class)
    assert jnp.allclose(out, ref, atol=1e-5, rtol=1e-5), "mismatch vs reference"

    # Multi-tile + ragged-batch check: grid > 1, masked partial last block
    # (no jnp.pad copy of x), resident W / bias across grid steps.
    B2 = 20
    x2 = jax.random.normal(kx2, (B2, num_class, hidden_dim), dtype=jnp.float32)
    out2 = jax.block_until_ready(groupwise_linear(x2, W, bias, block_b=8))
    ref2 = jnp.sum(W * x2, axis=-1) + bias
    assert out2.shape == (B2, num_class)
    assert jnp.allclose(out2, ref2, atol=1e-5, rtol=1e-5), "mismatch (tiled)"

    # bf16 inputs (halves HBM traffic on this memory-bound op) with in-kernel
    # f32 accumulation and f32 output.
    x_bf, W_bf = x2.astype(jnp.bfloat16), W.astype(jnp.bfloat16)
    out_bf = jax.block_until_ready(
        groupwise_linear(x_bf, W_bf, bias, block_b=8, out_dtype=jnp.float32))
    ref_bf = jnp.sum(W_bf.astype(jnp.float32) * x_bf.astype(jnp.float32),
                     axis=-1) + bias
    assert out_bf.shape == (B2, num_class)
    assert jnp.allclose(out_bf, ref_bf, atol=1e-4, rtol=1e-4), "mismatch (bf16)"

    print("KERNEL_OK")
</pallas_src>

<mosaic_0001>
module attributes {stable_mosaic.version = 11 : i64} {
  func.func @_groupwise_linear_kernel(%arg0: i32, %arg1: memref<2x8x32xf32, #tpu.memory_space<vmem>>, %arg2: memref<1x8x32xf32, #tpu.memory_space<vmem>>, %arg3: memref<1x8xf32, #tpu.memory_space<vmem>>, %arg4: memref<2x8xf32, #tpu.memory_space<vmem>>) attributes {dimension_semantics = [#tpu.dimension_semantics<parallel>], iteration_bounds = array<i64: 1>, scalar_prefetch = 0 : i64, scratch_operands = 0 : i64, tpu.core_type = #tpu.core_type<tc>, window_params = [{transform_indices = @transform_0, window_bounds = array<i64: 2, 8, 32>}, {pipeline_mode = #tpu.pipeline_mode<synchronous>, transform_indices = @transform_1, window_bounds = array<i64: 1, 8, 32>}, {pipeline_mode = #tpu.pipeline_mode<synchronous>, transform_indices = @transform_2, window_bounds = array<i64: 1, 8>}, {transform_indices = @transform_3, window_bounds = array<i64: 2, 8>}]} {
    %c0 = arith.constant 0 : index
    %c0_0 = arith.constant 0 : index
    %c0_1 = arith.constant 0 : index
    %0 = vector.load %arg1[%c0, %c0_0, %c0_1] : memref<2x8x32xf32, #tpu.memory_space<vmem>>, vector<2x8x32xf32>
    %c0_2 = arith.constant 0 : index
    %c0_3 = arith.constant 0 : index
    %c0_4 = arith.constant 0 : index
    %1 = vector.load %arg2[%c0_2, %c0_3, %c0_4] : memref<1x8x32xf32, #tpu.memory_space<vmem>>, vector<1x8x32xf32>
    %2 = vector.broadcast %1 : vector<1x8x32xf32> to vector<2x8x32xf32>
    %3 = arith.mulf %0, %2 : vector<2x8x32xf32>
    %cst = arith.constant dense<0.000000e+00> : vector<2x8xf32>
    %4 = vector.multi_reduction <add>, %3, %cst [2] : vector<2x8x32xf32> to vector<2x8xf32>
    %c0_5 = arith.constant 0 : index
    %c0_6 = arith.constant 0 : index
    %5 = vector.load %arg3[%c0_5, %c0_6] : memref<1x8xf32, #tpu.memory_space<vmem>>, vector<1x8xf32>
    %6 = vector.broadcast %5 : vector<1x8xf32> to vector<2x8xf32>
    %7 = arith.addf %4, %6 : vector<2x8xf32>
    %c0_7 = arith.constant 0 : index
    %c0_8 = arith.constant 0 : index
    %8 = vector.load %arg4[%c0_7, %c0_8] : memref<2x8xf32, #tpu.memory_space<vmem>>, vector<2x8xf32>
    tpu.vector_store %arg4[%c0_7, %c0_8], %7 {strides = array<i32>} : memref<2x8xf32, #tpu.memory_space<vmem>>, vector<2x8xf32>,
    return
  }
  func.func @transform_0(%arg0: i32) -> (i32, i32, i32) {
    %c0_i32 = arith.constant 0 : i32
    %c0_i32_0 = arith.constant 0 : i32
    %c0_i32_1 = arith.constant 0 : i32
    return %arg0, %c0_i32, %c0_i32_0 : i32, i32, i32
  }
  func.func @transform_1(%arg0: i32) -> (i32, i32, i32) {
    %c0_i32 = arith.constant 0 : i32
    %c0_i32_0 = arith.constant 0 : i32
    %c0_i32_1 = arith.constant 0 : i32
    %c0_i32_2 = arith.constant 0 : i32
    return %c0_i32, %c0_i32_0, %c0_i32_1 : i32, i32, i32
  }
  func.func @transform_2(%arg0: i32) -> (i32, i32) {
    %c0_i32 = arith.constant 0 : i32
    %c0_i32_0 = arith.constant 0 : i32
    %c0_i32_1 = arith.constant 0 : i32
    return %c0_i32, %c0_i32_0 : i32, i32
  }
  func.func @transform_3(%arg0: i32) -> (i32, i32) {
    %c0_i32 = arith.constant 0 : i32
    %c0_i32_0 = arith.constant 0 : i32
    return %arg0, %c0_i32 : i32, i32
  }
}

</mosaic_0001>

<bundles_post_ra>
// kernel: tpu_custom_call.1
= control target key start
LH: loop header
LB: loop body
LE: loop exit
PB: predicated region body
PF: predicated region fallthrough
CT: control target
= control target key end

     0   :  { %8 = vsyncpa [#allocation3], 0  ;;  %s217_s0 = inlined_call_operand.hbm [shape: f32[2,8,32], index: 0, kind: input, shape index: {}]   ;;  %s218_s1 = inlined_call_operand.hbm [shape: f32[1,8,32], index: 1, kind: input, shape index: {}]   ;;  %s219_s2 = inlined_call_operand.vmem [shape: f32[1,8], index: 2, kind: input, shape index: {}]   ;;  %s220_s3 = inlined_call_operand.hbm [shape: f32[2,8], index: 3, kind: output, shape index: {}]  }
   0x1   :  { %9 = vsyncpa [#allocation6], 0 }
   0x2   :  { %10 = vsyncpa [#allocation4], 0  ;;  %s179_s12 = smov [#allocation2]  }
   0x3   :  { %s16_s13 = sshll.u32 %s179_s12, 4  ;;  %s17_s13 = int_to_ptr.vmem [resolvable:$true] %s16_s13 }
   0x4   :  { %s121_s14 = scalar_lea.vmem %s17_s13, 256  ;;  %p126_p1 = scmp.lt.s32.totalorder %s17_s13, %s17_s13 }
   0x5   :  { %p122_p0 = scmp.ne.s32.totalorder %s17_s13, %s121_s14  ;;  %p127_p2 = scmp.lt.s32.totalorder %s121_s14, %s121_s14 }
   0x7   :  { %p128_p3 = por %p127_p2, %p126_p1 }
   0x9   :  { %p129_p4 = pnand %p128_p3, %p122_p0 }
   0xb   :  { %132 = shalt.err (!%p129_p4)
}
   0xc   :  { %s180_s15 = smov 128   ;;  %s181_s16 = smov 8  }
   0xd   :  { %22 = dma.hbm_to_vmem [thread:$0]  %s217_s0, 256, %s17_s13, [#allocation3], %s180_s15, %s180_s15, %s181_s16  }
   0xe   :  { %s182_s19 = smov [#allocation5]  }
   0xf   :  { %s29_s20 = sshll.u32 %s182_s19, 4  ;;  %s30_s20 = int_to_ptr.vmem [resolvable:$true] %s29_s20 }
  0x10   :  { %s141_s21 = scalar_lea.vmem %s30_s20, 128  ;;  %p146_p6 = scmp.lt.s32.totalorder %s30_s20, %s30_s20 }
  0x11   :  { %p142_p5 = scmp.ne.s32.totalorder %s30_s20, %s141_s21  ;;  %p147_p7 = scmp.lt.s32.totalorder %s141_s21, %s141_s21 }
  0x13   :  { %p148_p8 = por %p147_p7, %p146_p6 }
  0x15   :  { %p149_p9 = pnand %p148_p8, %p142_p5 }
  0x17   :  { %152 = shalt.err (!%p149_p9)
}
  0x18   :  { %32 = dma.hbm_to_vmem [thread:$0]  %s218_s1, 128, %s30_s20, [#allocation6]  }
  0x19   :  { %173 = dma.done.wait [#allocation3], 256  }
  0x1a   :  { %174 = vsyncadd [#allocation3], 4294967040 }
  0x1b   :  { %175 = dma.done.wait [#allocation6], 128  }
  0x1c   :  { %176 = vsyncadd [#allocation6], 4294967168  ;;  %v41_v0 = vld [vmem:[#allocation2] sm:$0xff]  ;;  %v43_v1 = vld [vmem:[#allocation5] sm:$0xff]  ;;  %vm46_vm0 = vcmask 261120   ;;  %v183_v8 = vmov 0   ;;  %v73_v14 = vlaneseq }
  0x1d   :  { %v42_v2 = vld [vmem:[#allocation2 + $0x8] sm:$0xff]  ;;  %v44_v3 = vmul.f32 %v43_v1, %v41_v0  ;;  %v104_v5 = vld [vmem:[%s219_s2] ss:$0 sm:$0xff]  ;;  %111 = vset.pattern.permute.xlu1 %v183_v8  ;;  %112 = vset.pattern.permute.xlu0 %v183_v8  ;;  %s184_s1 = smov [#allocation7]   ;;  %vm83_vm1 = vcmask 1041409   ;;  %vm86_vm2 = vcmask 58368  }
  0x1e   :  { %v45_v4 = vmul.f32 %v43_v1, %v42_v2  ;;  %60 = vbcast.lane.b32.xlu1 %v104_v5, 256  ;;  %v74_v15 = vand.u32 127, %v73_v14  ;;  %v76_v16 = vshrl.u32 %v73_v14, 7  ;;  %s94_s2 = sshll.u32 %s184_s1, 4  ;;  %s95_s2 = int_to_ptr.vmem [resolvable:$true] %s94_s2 }
  0x1f   :  { %v47_v6 = vsel %vm46_vm0, %v44_v3, 0.0  ;;  %s153_s25 = scalar_lea.vmem %s95_s2, 32  ;;  %p158_p11 = scmp.lt.s32.totalorder %s95_s2, %s95_s2 }
  0x20   :  { %48 = vadd.xlane.f32.xlu0 %v47_v6  ;;  %v50_v7 = vsel %vm46_vm0, %v45_v4, 0.0  ;;  %v77_v17 = vsub.s32 %v74_v15, %v76_v16  ;;  %p154_p10 = scmp.ne.s32.totalorder %s95_s2, %s153_s25  ;;  %p159_p12 = scmp.lt.s32.totalorder %s153_s25, %s153_s25 }
  0x22   :  { %p160_p13 = por %p159_p12, %p158_p11 }
  0x24   :  { %51 = vadd.xlane.f32.xlu0 %v50_v7  ;;  %p161_p0 = pnand %p160_p13, %p154_p10 }
  0x90   :  { %v61_v9 = vpop.permute.xlu1 %60 }
  0xa9   :  { %v49_v10 = vpop.xlane.xlu0 %48 }
  0xaa   :  { %v63_v11 = vadd.f32 %v61_v9, %v49_v10 }
  0xac   :  { %68 = vperm.xlu1 %111, %v63_v11  }
  0xad   :  { %v52_v12 = vpop.xlane.xlu0 %51 }
  0xae   :  { %v64_v13 = vadd.f32 %v61_v9, %v52_v12 }
  0xb0   :  { %71 = vperm.xlu0 %112, %v64_v13  }
 0x127   :  { %v69_v18 = vpop.permute.xlu1 %68 }
 0x128   :  { %v78_v20 = vrot.slane %v69_v18, %v77_v17 }
 0x12b   :  { %v72_v19 = vpop.permute.xlu0 %71 }
 0x12c   :  { %v82_v21 = vrot.slane %v72_v19, %v77_v17 }
 0x12e   :  { %v84_v22 = vsel %vm83_vm1, %v82_v21, %v78_v20 }
 0x12f   :  { %87 = vst.msk [vmem:[#allocation7] sm:$0x3] %vm86_vm2, %v84_v22 }
 0x130   :  { %164 = shalt.err (!%p161_p0)
}
 0x131   :  { %97 = dma.vmem_to_hbm [thread:$0]  %s95_s2, 32, %s220_s3, [#allocation4]  }
 0x132   :  { %177 = dma.done.wait [#allocation4], 32  }
 0x133   :  { %178 = vsyncadd [#allocation4], 4294967264 }
 0x134   :  { %101 = vsyncpa [#allocation3], 1 }
 0x135   :  { %102 = vsyncpa [#allocation6], 1 }
 0x136   :  { %103 = vsyncpa [#allocation4], 1 }

</bundles_post_ra>
